<compile_context>
chip_gen: v6e
topology: v6e:2x2x1
jax: 0.10.0
libtpu: 0.0.40
codegen_flags: <defaults>
</compile_context>

<pallas_src>
import functools
import math

import jax
import jax.numpy as jnp
from jax.experimental import pallas as pl
from jax.experimental.pallas import tpu as pltpu


def _round_up(x, m):
    return ((x + m - 1) // m) * m


# ----------------------------------------------------------------------------
# Pallas kernel: tiled  out = A @ XW + bias  (optional relu)
#   axis 0: row tiles of A / out      -> "parallel"
#   axis 1: K tiles (num_rels * n)    -> "arbitrary" reduction, innermost
# The output block is the accumulator (same block index for every k).
# ----------------------------------------------------------------------------
def _matmul_bias_kernel(a_ref, xw_ref, b_ref, o_ref, *, apply_relu):
    k = pl.program_id(1)

    @pl.when(k == 0)
    def _():
        o_ref[...] = jnp.zeros_like(o_ref)

    o_ref[...] += jnp.dot(a_ref[...], xw_ref[...],
                          preferred_element_type=jnp.float32)

    @pl.when(k == pl.num_programs(1) - 1)
    def _():
        res = o_ref[...] + b_ref[...]
        if apply_relu:
            res = jnp.maximum(res, 0.0)
        o_ref[...] = res


def _prepare_A(A, compute_dtype, tm, tk):
    """Cast + pad A once; the padded buffer is streamed by BOTH layers."""
    M, K = A.shape
    m_pad = _round_up(M, tm)
    k_pad = _round_up(K, tk)
    A_c = A.astype(compute_dtype)
    if (m_pad, k_pad) != (M, K):
        A_c = jnp.pad(A_c, ((0, m_pad - M), (0, k_pad - K)))
    return A_c


def rgcn_matmul(A_p, XW, bias, *, M, apply_relu, compute_dtype, tm, tk):
    """out = A (M,K) @ XW (K,N) + bias, relu optional; f32 accumulation.

    A_p is the pre-cast / pre-padded adjacency (m_pad, k_pad) with
    m_pad % tm == 0 and k_pad % tk == 0.
    """
    m_pad, k_pad = A_p.shape
    K, N = XW.shape
    assert m_pad >= M and k_pad >= K
    assert m_pad % tm == 0 and k_pad % tk == 0
    assert bias.shape == (N,)

    # lane-dense output padding; streamed XW cast to the compute dtype
    n_pad = _round_up(N, 128)
    XW_c = XW.astype(compute_dtype)
    if (k_pad, n_pad) != (K, N):
        XW_c = jnp.pad(XW_c, ((0, k_pad - K), (0, n_pad - N)))
    bias_p = jnp.pad(bias.astype(jnp.float32), (0, n_pad - N)).reshape(1, n_pad)

    grid = (m_pad // tm, k_pad // tk)

    itemsize = jnp.dtype(compute_dtype).itemsize
    cost = pl.CostEstimate(
        flops=2 * m_pad * k_pad * n_pad,
        transcendentals=0,
        bytes_accessed=(m_pad * k_pad * itemsize                 # A streamed once
                        + k_pad * n_pad * itemsize * grid[0]     # XW per row tile
                        + m_pad * n_pad * 4),                    # output writeback
    )

    kernel = functools.partial(_matmul_bias_kernel, apply_relu=apply_relu)
    out = pl.pallas_call(
        kernel,
        out_shape=jax.ShapeDtypeStruct((m_pad, n_pad), jnp.float32),
        grid_spec=pltpu.PrefetchScalarGridSpec(
            num_scalar_prefetch=0,
            grid=grid,
            in_specs=[
                pl.BlockSpec((tm, tk), lambda i, k: (i, k)),      # A tile (streamed)
                pl.BlockSpec((tk, n_pad), lambda i, k: (k, 0)),   # XW K-slab
                pl.BlockSpec((1, n_pad), lambda i, k: (0, 0)),    # bias (resident)
            ],
            out_specs=pl.BlockSpec((tm, n_pad), lambda i, k: (i, 0)),  # acc-resident
        ),
        compiler_params=pltpu.CompilerParams(
            dimension_semantics=("parallel", "arbitrary"),
            vmem_limit_bytes=32 * 1024 * 1024,
        ),
        cost_estimate=cost,
    )(A_p, XW_c, bias_p)

    return out[:M, :N]


# ----------------------------------------------------------------------------
# Module: parameters + forward (eval / 'full' path)
# ----------------------------------------------------------------------------
def xavier_uniform(key, shape, gain):
    recep = 1
    for d in shape[2:]:
        recep *= d
    fan_in = shape[1] * recep
    fan_out = shape[0] * recep
    bound = gain * math.sqrt(6.0 / (fan_in + fan_out))
    return jax.random.uniform(key, shape, jnp.float32, -bound, bound)


def init_params(key, feat_size, embed_size, num_classes, num_rels, num_bases):
    gain = math.sqrt(2.0)  # nn.init.calculate_gain('relu')
    k1, k2, k3, k4 = jax.random.split(key, 4)
    return {
        "comp1": xavier_uniform(k1, (num_rels, num_bases), gain),
        "bases1": xavier_uniform(k2, (num_bases, feat_size, embed_size), gain),
        "comp2": xavier_uniform(k3, (num_rels, num_bases), gain),
        "bases2": xavier_uniform(k4, (num_bases, embed_size, num_classes), gain),
        "bias1": jnp.zeros((embed_size,), jnp.float32),
        "bias2": jnp.zeros((num_classes,), jnp.float32),
    }


def mini_batch_rgcn_full_forward(params, X, A, num_rels, *,
                                 compute_dtype=jnp.bfloat16, tm=1024, tk=1024):
    n = X.shape[0]
    rn = A.shape[1]
    assert A.shape == (n, rn) and rn == num_rels * n

    # clip tiles to the (padded) problem size
    tm_e = min(tm, _round_up(n, 128))
    tk_e = min(tk, _round_up(rn, 128))

    # single cast + pad of the dominant stream; reused by both layers
    A_p = _prepare_A(A, compute_dtype, tm_e, tk_e)

    # basis decomposition + per-relation feature transform (tiny FLOPs; plain JAX)
    w1 = jnp.einsum("rb,beh->reh", params["comp1"], params["bases1"])  # (R, feat, embed)
    w2 = jnp.einsum("rb,bho->rho", params["comp2"], params["bases2"])  # (R, embed, classes)

    # layer 1: h1 = relu(A @ vstack_r(X @ W1_r) + bias1)
    xw1 = jnp.einsum("ne,reh->rnh", X, w1).reshape(rn, -1)
    h1 = rgcn_matmul(A_p, xw1, params["bias1"], M=n, apply_relu=True,
                     compute_dtype=compute_dtype, tm=tm_e, tk=tk_e)

    # layer 2: h2 = A @ vstack_r(h1 @ W2_r) + bias2
    xw2 = jnp.einsum("nh,rhc->rnc", h1, w2).reshape(rn, -1)
    h2 = rgcn_matmul(A_p, xw2, params["bias2"], M=n, apply_relu=False,
                     compute_dtype=compute_dtype, tm=tm_e, tk=tk_e)
    return h2


def reference_forward(params, X, A, num_rels, compute_dtype=jnp.float32):
    n = X.shape[0]
    w1 = jnp.einsum("rb,beh->reh", params["comp1"], params["bases1"])
    w2 = jnp.einsum("rb,bho->rho", params["comp2"], params["bases2"])
    xw1 = jnp.einsum("ne,reh->rnh", X, w1).reshape(num_rels * n, -1)
    h1 = jnp.dot(A.astype(compute_dtype), xw1.astype(compute_dtype),
                 preferred_element_type=jnp.float32) + params["bias1"]
    h1 = jax.nn.relu(h1)
    xw2 = jnp.einsum("nh,rhc->rnc", h1, w2).reshape(num_rels * n, -1)
    return jnp.dot(A.astype(compute_dtype), xw2.astype(compute_dtype),
                   preferred_element_type=jnp.float32) + params["bias2"]


if __name__ == "__main__":
    # small shapes consistent with the module's eval/'full' forward
    n = 256
    feat_size = 64
    embed_size = 64
    num_classes = 16
    num_rels = 3
    num_bases = 2

    key = jax.random.PRNGKey(0)
    kp, kx, ka = jax.random.split(key, 3)

    params = init_params(kp, feat_size, embed_size, num_classes, num_rels, num_bases)

    X = jax.random.normal(kx, (n, feat_size), jnp.float32)
    # dense (row-normalized-ish, sparse-looking) adjacency, shape (n, num_rels*n)
    A = jax.random.uniform(ka, (n, num_rels * n), jnp.float32)
    A = jnp.where(A > 0.9, A, 0.0) / float(n)

    # small tiles so the test exercises multiple row tiles and k-steps
    run_kwargs = dict(tm=128, tk=256)

    # exact f32 path — matches the torch.FloatTensor semantics of the module
    out_f32 = mini_batch_rgcn_full_forward(params, X, A, num_rels,
                                           compute_dtype=jnp.float32, **run_kwargs)
    out_f32 = jax.block_until_ready(out_f32)
    ref_f32 = reference_forward(params, X, A, num_rels, compute_dtype=jnp.float32)
    assert out_f32.shape == (n, num_classes)
    assert jnp.allclose(out_f32, ref_f32, atol=1e-4, rtol=1e-4), "f32 mismatch"

    # default fast path — bf16 streamed operands, f32 accumulation
    out_bf16 = mini_batch_rgcn_full_forward(params, X, A, num_rels, **run_kwargs)
    out_bf16 = jax.block_until_ready(out_bf16)
    ref_bf16 = reference_forward(params, X, A, num_rels, compute_dtype=jnp.bfloat16)
    assert jnp.allclose(out_bf16, ref_bf16, atol=1e-2, rtol=1e-2), "bf16 mismatch"

    print("KERNEL_OK")
</pallas_src>

<mosaic_0001>
module attributes {stable_mosaic.version = 11 : i64} {
  func.func @_matmul_bias_kernel(%arg0: i32, %arg1: i32, %arg2: memref<128x256xf32, #tpu.memory_space<vmem>>, %arg3: memref<256x128xf32, #tpu.memory_space<vmem>>, %arg4: memref<1x128xf32, #tpu.memory_space<vmem>>, %arg5: memref<128x128xf32, #tpu.memory_space<vmem>>) attributes {dimension_semantics = [#tpu.dimension_semantics<parallel>, #tpu.dimension_semantics<arbitrary>], iteration_bounds = array<i64: 2, 3>, scalar_prefetch = 0 : i64, scratch_operands = 0 : i64, tpu.core_type = #tpu.core_type<tc>, window_params = [{transform_indices = @transform_0, window_bounds = array<i64: 128, 256>}, {transform_indices = @transform_1, window_bounds = array<i64: 256, 128>}, {pipeline_mode = #tpu.pipeline_mode<synchronous>, transform_indices = @transform_2, window_bounds = array<i64: 1, 128>}, {transform_indices = @transform_3, window_bounds = array<i64: 128, 128>}]} {
    %c0_i32 = arith.constant 0 : i32
    %0 = arith.cmpi eq, %arg1, %c0_i32 : i32
    %1 = arith.extui %0 : i1 to i32
    %c0_i32_0 = arith.constant 0 : i32
    %2 = arith.cmpi ne, %1, %c0_i32_0 : i32
    scf.if %2 {
      %cst_9 = arith.constant 0.000000e+00 : f32
      %12 = vector.broadcast %cst_9 : f32 to vector<128x128xf32>
      %c0_10 = arith.constant 0 : index
      %c0_11 = arith.constant 0 : index
      %13 = vector.load %arg5[%c0_10, %c0_11] : memref<128x128xf32, #tpu.memory_space<vmem>>, vector<128x128xf32>
      tpu.vector_store %arg5[%c0_10, %c0_11], %12 {strides = array<i32>} : memref<128x128xf32, #tpu.memory_space<vmem>>, vector<128x128xf32>,
    } else {
    }
    %c0 = arith.constant 0 : index
    %c0_1 = arith.constant 0 : index
    %3 = vector.load %arg5[%c0, %c0_1] : memref<128x128xf32, #tpu.memory_space<vmem>>, vector<128x128xf32>
    %c0_2 = arith.constant 0 : index
    %c0_3 = arith.constant 0 : index
    %4 = vector.load %arg2[%c0_2, %c0_3] : memref<128x256xf32, #tpu.memory_space<vmem>>, vector<128x256xf32>
    %c0_4 = arith.constant 0 : index
    %c0_5 = arith.constant 0 : index
    %5 = vector.load %arg3[%c0_4, %c0_5] : memref<256x128xf32, #tpu.memory_space<vmem>>, vector<256x128xf32>
    %cst = arith.constant dense<0.000000e+00> : vector<128x128xf32>
    %6 = tpu.matmul %4, %5, %cst {dimension_numbers = #tpu.dot_dimension_numbers<[1], [0], [0], [1], [0, 0, 1, 1], [], []>} : vector<128x256xf32>, vector<256x128xf32>, vector<128x128xf32> -> vector<128x128xf32>
    %7 = arith.addf %3, %6 : vector<128x128xf32>
    %c0_6 = arith.constant 0 : index
    %c0_7 = arith.constant 0 : index
    %8 = vector.load %arg5[%c0_6, %c0_7] : memref<128x128xf32, #tpu.memory_space<vmem>>, vector<128x128xf32>
    tpu.vector_store %arg5[%c0_6, %c0_7], %7 {strides = array<i32>} : memref<128x128xf32, #tpu.memory_space<vmem>>, vector<128x128xf32>,
    %c2_i32 = arith.constant 2 : i32
    %9 = arith.cmpi eq, %arg1, %c2_i32 : i32
    %10 = arith.extui %9 : i1 to i32
    %c0_i32_8 = arith.constant 0 : i32
    %11 = arith.cmpi ne, %10, %c0_i32_8 : i32
    scf.if %11 {
      %c0_9 = arith.constant 0 : index
      %c0_10 = arith.constant 0 : index
      %12 = vector.load %arg5[%c0_9, %c0_10] : memref<128x128xf32, #tpu.memory_space<vmem>>, vector<128x128xf32>
      %c0_11 = arith.constant 0 : index
      %c0_12 = arith.constant 0 : index
      %13 = vector.load %arg4[%c0_11, %c0_12] : memref<1x128xf32, #tpu.memory_space<vmem>>, vector<1x128xf32>
      %14 = vector.broadcast %13 : vector<1x128xf32> to vector<128x128xf32>
      %15 = arith.addf %12, %14 : vector<128x128xf32>
      %cst_13 = arith.constant 0.000000e+00 : f32
      %16 = vector.broadcast %cst_13 : f32 to vector<128x128xf32>
      %17 = arith.maximumf %15, %16 : vector<128x128xf32>
      %c0_14 = arith.constant 0 : index
      %c0_15 = arith.constant 0 : index
      %18 = vector.load %arg5[%c0_14, %c0_15] : memref<128x128xf32, #tpu.memory_space<vmem>>, vector<128x128xf32>
      tpu.vector_store %arg5[%c0_14, %c0_15], %17 {strides = array<i32>} : memref<128x128xf32, #tpu.memory_space<vmem>>, vector<128x128xf32>,
    } else {
    }
    return
  }
  func.func @transform_0(%arg0: i32, %arg1: i32) -> (i32, i32) {
    %c0_i32 = arith.constant 0 : i32
    return %arg0, %arg1 : i32, i32
  }
  func.func @transform_1(%arg0: i32, %arg1: i32) -> (i32, i32) {
    %c0_i32 = arith.constant 0 : i32
    %c0_i32_0 = arith.constant 0 : i32
    return %arg1, %c0_i32 : i32, i32
  }
  func.func @transform_2(%arg0: i32, %arg1: i32) -> (i32, i32) {
    %c0_i32 = arith.constant 0 : i32
    %c0_i32_0 = arith.constant 0 : i32
    %c0_i32_1 = arith.constant 0 : i32
    return %c0_i32, %c0_i32_0 : i32, i32
  }
  func.func @transform_3(%arg0: i32, %arg1: i32) -> (i32, i32) {
    %c0_i32 = arith.constant 0 : i32
    %c0_i32_0 = arith.constant 0 : i32
    return %arg0, %c0_i32 : i32, i32
  }
}

</mosaic_0001>

<bundles_post_ra>
// kernel: tpu_custom_call.1
= control target key start
LH: loop header
LB: loop body
LE: loop exit
PB: predicated region body
PF: predicated region fallthrough
CT: control target
= control target key end

     0   :  { %s1684_s0 = inlined_call_operand.hbm [shape: f32[256,768], index: 0, kind: input, shape index: {}]   ;;  %s1685_s1 = inlined_call_operand.hbm [shape: f32[768,128], index: 1, kind: input, shape index: {}]   ;;  %s1686_s2 = inlined_call_operand.vmem [shape: f32[1,128], index: 2, kind: input, shape index: {}]   ;;  %s1687_s3 = inlined_call_operand.hbm [shape: f32[256,128], index: 3, kind: output, shape index: {}]  }
   0x1   :  { %1693 = sst [smem:[#allocation16_spill]] %s1684_s0 }
   0x2   :  { %1694 = sst [smem:[#allocation17_spill]] %s1686_s2 }
   0x3   :  { %1695 = sst [smem:[#allocation18_spill]] %s1687_s3 }
   0x4   :  { %8 = vsyncpa [#allocation3], 0 }
   0x5   :  { %10 = vsyncpa [#allocation3 + $0x1], 0 }
   0x6   :  { %11 = vsyncpa [#allocation6], 0 }
   0x7   :  { %13 = vsyncpa [#allocation6 + $0x1], 0 }
   0x8   :  { %14 = vsyncpa [#allocation4], 0 }
   0x9   :  { %16 = vsyncpa [#allocation4 + $0x1], 0  ;;  %s1241_s12 = smov 0   ;;  %s1243_s13 = smov 0  }
   0xa   :  { %s1245_s14 = smov 0   ;;  %s1247_s15 = smov 0  }
   0xb   :  { %s1249_s16 = smov 0   ;;  %s1251_s17 = smov 0  }
   0xc   :  { %s1253_s18 = smov 0   ;;  %s1255_s19 = smov 0  }
   0xd   :  { %s1257_s20 = smov 0   ;;  %s1259_s21 = smov 0  }
   0xe   :  { %s1261_s22 = smov 0   ;;  %s1263_s23 = smov 0  }
   0xf   :  { %s1265_s24 = smov 0   ;;  %s1267_s25 = smov 0  }
  0x10 LB: > { %1696 = sst [smem:[#allocation11_spill]] %s1192_s21  ;;  %s31_s26 = sadd.s32 1, %s1200_s23  ;;  %s1208_s25 = sphi %s1267_s25, %s22_s25   ;;  %s1204_s24 = sphi %s1265_s24, %s1721_s24   ;;  %s1200_s23 = sphi %s1263_s23, %s1733_s23   ;;  %s1196_s22 = sphi %s1261_s22, %s1732_s22   ;;  %s1192_s21 = sphi %s1259_s21, %s1731_s21   ;;  %s1188_s20 = sphi %s1257_s20, %s1730_s20   ;;  %s1184_s19 = sphi %s1255_s19, %s1729_s19   ;;  %s1180_s18 = sphi %s1253_s18, %s1728_s18   ;;  %s1176_s17 = sphi %s1251_s17, %s1727_s17   ;;  %s1172_s16 = sphi %s1249_s16, %s1726_s16   ;;  %s1168_s15 = sphi %s1247_s15, %s1725_s15   ;;  %s1164_s14 = sphi %s1245_s14, %s1724_s14   ;;  %s1160_s13 = sphi %s1243_s13, %s1723_s13   ;;  %s1156_s12 = sphi %s1241_s12, %s1722_s12  }
  0x11   : > { %1697 = sst [smem:[#allocation12_spill]] %s1196_s22  ;;  %s34_s27 = sadd.s32 1, %s1204_s24 }
  0x12   : > { %1698 = sst [smem:[#allocation13_spill]] %s1204_s24  ;;  %p32_p0 = scmp.ge.s32.totalorder %s31_s26, 3 }
  0x13   : > { %s43_s28 = sadd.s32 1, %s1188_s20  ;;  %p50_p1 = scmp.ne.s32.totalorder %s1188_s20, %s1184_s19 }
  0x14   : > { %p51_p2 = scmp.eq.s32.totalorder %s1208_s25, 0  ;;  %s1735_s26 = smov (%p32_p0, %s31_s26), 0 }
  0x15   : > { %1699 = sst [smem:[#allocation14_spill]] %s1735_s26  ;;  %s1737_s27 = smov (!%p32_p0, %s34_s27), %s1204_s24 }
  0x16   : > { %s1322_s29 = ssub.s32 %s1200_s23, %s1735_s26  ;;  %p1326_p3 = por %p51_p2, %p50_p1 }
  0x17   : > { %p36_p4 = scmp.ge.s32.totalorder %s1737_s27, 2  ;;  %p56_p5 = scmp.ne.s32.totalorder %s1184_s19, %s1180_s18 }
  0x18   : > { %s116_s4 = sadd.s32 1, %s1164_s14  ;;  %p1692_p6 = scmp.lt.s32.totalorder %s1208_s25, 6 }
  0x19   : > { %s1739_s27 = smov (%p36_p4, %s1737_s27), 0  ;;  %s156_s5 = sand.u32 1, %s1188_s20  }
  0x1a   : > { %1701 = sst [smem:[#allocation15_spill]] %s1739_s27  ;;  %s38_s6 = ssub.s32 %s1204_s24, %s1739_s27 }
  0x1b   : > { %s40_s7 = sor.u32 %s1322_s29, %s38_s6  ;;  %p114_p7 = scmp.eq.s32.totalorder %s38_s6, 0 }
  0x1c   : > { %p41_p8 = scmp.eq.s32.totalorder %s40_s7, 0  ;;  %s730_s8 = sshll.u32 %s156_s5, 8 }
  0x1d   : > { %s1341_s9 = scalar_select %p114_p7, %s1164_s14, %s116_s4  }
  0x1e   : > { %s1344_s10 = scalar_select %p41_p8, %s1188_s20, %s43_s28  }
  0x1f   : > { %s732_s11 = sshll.u32 %s1200_s23, 1  ;;  %s864_s26 = smul.u32 96, %s1204_s24 }
  0x20   : > { %s160_s3 = scalar_lea.vmem [#allocation2], %s730_s8  ;;  %p1352_p9 = pnand %p1692_p6, %p1326_p3 }
  0x21   : > { %s170_s22 = sshll.u32 %s160_s3, 4  ;;  %s167_s27 = sadd.s32 %s864_s26, %s732_s11  ;;  %s171_s22 = int_to_ptr.vmem [resolvable:$true] %s170_s22 }
  0x22   : > { %s734_s6 = sshll.u32 %s167_s27, 7  ;;  %s1703_s0 = sld [smem:[#allocation16_spill]] }
  0x23   : > { %p738_p10 = scmp.ge.s32.totalorder %s1208_s25, 1  ;;  %s157_s28 = scalar_lea.sflag [#allocation3], %s156_s5 }
  0x24   : > { %p1006_p11 = pneg %p1352_p9  ;;  %s1017_s8 = scalar_lea.vmem %s171_s22, 4096 }
  0x25   : > { %p1018_p12 = scmp.ne.s32.totalorder %s171_s22, %s1017_s8  ;;  %s1210_s3 = smov [#allocation2]  }
  0x26   : > { %s1022_s30 = sshll.u32 %s1210_s3, 4  ;;  %s1023_s30 = int_to_ptr.vmem [resolvable:$false] %s1022_s30 }
  0x27   : > { %p1020_p13 = pnand %p1018_p12, %p1006_p11  ;;  %s1024_s24 = scalar_lea.vmem %s1023_s30, 8192 }
  0x28   : > { %s169_s4 = scalar_lea.hbm %s1703_s0, %s734_s6  ;;  %p1025_p1 = scmp.lt.s32.totalorder %s171_s22, %s1023_s30 }
  0x29   : > { %p1021_p0 = pneg %p1020_p13  ;;  %p1026_p3 = scmp.lt.s32.totalorder %s1024_s24, %s1017_s8 }
  0x2b   : > { %p1027_p4 = por %p1026_p3, %p1025_p1 }
  0x2d   : > { %p1028_p7 = pnand %p1027_p4, %p1021_p0 }
  0x2f   : > { %1031 = shalt.err (!%p1028_p7)
}
  0x30   : > { %s1211_s26 = smov 768   ;;  %s1212_s21 = smov 256  }
  0x31   : > { %s1213_s24 = smov 16   ;;  %p199_p8 = scmp.lt.s32.totalorder %s1208_s25, 7 }
  0x32   : > { %874 = dma.hbm_to_vmem [thread:$0]  (!%p1352_p9), %s169_s4, 4096, %s171_s22, %s157_s28, %s1211_s26, %s1212_s21, %s1213_s24  }
  0x33   : > { %p1367_p11 = pnand %p738_p10, %p199_p8  ;;  %s726_s5 = sadd.s32 4294967295, %s1208_s25  }
  0x34   : > { %s727_s11 = sadd.s32 4294967294, %s1208_s25   ;;  %p57_p12 = scmp.eq.s32.totalorder %s726_s5, 0 }
  0x35   : > { %p67_p13 = scmp.eq.s32.totalorder %s1322_s29, 0  ;;  %s69_s6 = sadd.s32 1, %s1176_s17 }
  0x36   : > { %p76_p0 = scmp.ne.s32.totalorder %s1176_s17, %s1172_s16  ;;  %p1380_p1 = por %p57_p12, %p56_p5 }
  0x37   : > { %p82_p9 = scmp.ne.s32.totalorder %s1172_s16, %s1168_s15  ;;  %p126_p4 = scmp.ne.s32.totalorder %s1164_s14, %s1160_s13 }
  0x38   : > { %s1387_s22 = scalar_select %p67_p13, %s1176_s17, %s69_s6  }
  0x39   : > { %p1391_p10 = por %p76_p0, %p51_p2  ;;  %p1395_p3 = por %p82_p9, %p57_p12 }
  0x3a   : > { %p127_p7 = scmp.eq.s32.totalorder %s726_s5, 5  ;;  %p132_p5 = scmp.ne.s32.totalorder %s1160_s13, %s1156_s12 }
  0x3b   : > { %p133_p8 = scmp.eq.s32.totalorder %s727_s11, 5  ;;  %s180_s15 = sand.u32 1, %s1176_s17  }
  0x3c   : > { %p1403_p6 = por %p127_p7, %p126_p4  ;;  %s735_s28 = sshll.u32 %s180_s15, 8 }
  0x3d   : > { %p1408_p13 = por %p133_p8, %p132_p5  ;;  %s750_s8 = sshll.u32 %s1200_s23, 12 }
  0x3e   : > { %s190_s26 = scalar_lea.hbm %s1685_s1, %s750_s8  ;;  %s184_s21 = scalar_lea.vmem [#allocation5], %s735_s28 }
  0x3f   : > { %s1709_s4 = scalar_select %p1408_p13, 1, 0 }
  0x40   : > { %s191_s24 = sshll.u32 %s184_s21, 4  ;;  %p1710_p2 = scmp.lt.s32.totalorder %s1208_s25, 6  ;;  %s192_s24 = int_to_ptr.vmem [resolvable:$true] %s191_s24 }
  0x41   : > { %s181_s11 = scalar_lea.sflag [#allocation6], %s180_s15  ;;  %s1045_s6 = scalar_lea.vmem %s192_s24, 4096 }
  0x42   : > { %p1420_p12 = pnand %p1710_p2, %p1391_p10  ;;  %p1046_p9 = scmp.ne.s32.totalorder %s192_s24, %s1045_s6 }
  0x43   : > { %s1214_s0 = smov [#allocation5]  }
  0x44   : > { %p1034_p0 = pneg %p1420_p12  ;;  %s1050_s3 = sshll.u32 %s1214_s0, 4  ;;  %s1051_s3 = int_to_ptr.vmem [resolvable:$false] %s1050_s3 }
  0x45   : > { %s1052_s28 = scalar_lea.vmem %s1051_s3, 8192  ;;  %p1053_p5 = scmp.lt.s32.totalorder %s192_s24, %s1051_s3 }
  0x46   : > { %p1048_p4 = pnand %p1046_p9, %p1034_p0  ;;  %p1054_p8 = scmp.lt.s32.totalorder %s1052_s28, %s1045_s6 }
  0x48   : > { %p1049_p7 = pneg %p1048_p4  ;;  %p1055_p13 = por %p1054_p8, %p1053_p5 }
  0x4a   : > { %p1056_p10 = pnand %p1055_p13, %p1049_p7 }
  0x4c   : > { %1059 = shalt.err (!%p1056_p10)
}
  0x4d   : > { %s1215_s7 = smov 128   ;;  %s1216_s8 = smov 8  }
  0x4e   : > { %877 = dma.hbm_to_vmem [thread:$0]  (!%p1420_p12), %s190_s26, 4096, %s192_s24, %s181_s11, %s1215_s7, %s1215_s7, %s1216_s8  }
  0x4f   : > { %203 = sbr.rel (%p1367_p11) target bundleno = 412 (0x19c), region = 32  ;;  %s205_s15 = sand.u32 (!%p1367_p11), 1, %s1184_s19  }
  0x50   : > { %s739_s30 = sshll.u32 (!%p1367_p11), %s205_s15, 8  ;;  %s206_s0 = scalar_lea.sflag (!%p1367_p11), [#allocation3], %s205_s15 }
  0x51   : > { %s1431_s21 = scalar_lea.vmem (!%p1367_p11), [#allocation2], %s739_s30 }
  0x54   : > { %1143 = dma.done.wait (%p1380_p1), %s206_s0, 4096  }
  0x55   : > { %1145 = vsyncadd (%p1380_p1), %s206_s0, 4294963200  ;;  %s214_s6 = sand.u32 1, %s1172_s16  }
  0x56   : > { %s740_s5 = sshll.u32 %s214_s6, 8  ;;  %s215_s26 = scalar_lea.sflag [#allocation6], %s214_s6 }
  0x57   : > { %s1438_s24 = scalar_lea.vmem [#allocation5], %s740_s5 }
  0x58   : > { %1147 = dma.done.wait (%p1395_p3), %s215_s26, 4096  }
  0x59   : > { %1149 = vsyncadd (%p1395_p3), %s215_s26, 4294963200  ;;  %s243_s27 = sand.u32 1, %s1160_s13   ;;  %s1712_s2 = sld [smem:[#allocation11_spill]] }
  0x5a   : > { %s741_s11 = sshll.u32 %s243_s27, 7 }
  0x5b   : > { %s1447_s3 = scalar_lea.vmem [#allocation7], %s741_s11 }
  0x5f   : > { %p742_p11 = scmp.ne.s32.totalorder %s1712_s2, 0 }
  0x61   : > { %253 = sbr.rel (%p742_p11) target bundleno = 111 (0x6f), region = 44 }
  0x66   : > { %v1217_v0 = vmov 0.0  }
  0x67   : > { %254 = vst [vmem:[%s1447_s3] sm:$0xff] %v1217_v0  ;;  %255 = vst [vmem:[%s1447_s3 + $0x8] sm:$0xff] %v1217_v0 }
  0x68   : > { %256 = vst [vmem:[%s1447_s3 + $0x10] sm:$0xff] %v1217_v0  ;;  %257 = vst [vmem:[%s1447_s3 + $0x18] sm:$0xff] %v1217_v0 }
  0x69   : > { %258 = vst [vmem:[%s1447_s3 + $0x20] sm:$0xff] %v1217_v0  ;;  %259 = vst [vmem:[%s1447_s3 + $0x28] sm:$0xff] %v1217_v0 }
  0x6a   : > { %260 = vst [vmem:[%s1447_s3 + $0x30] sm:$0xff] %v1217_v0  ;;  %261 = vst [vmem:[%s1447_s3 + $0x38] sm:$0xff] %v1217_v0 }
  0x6b   : > { %262 = vst [vmem:[%s1447_s3 + $0x40] sm:$0xff] %v1217_v0  ;;  %263 = vst [vmem:[%s1447_s3 + $0x48] sm:$0xff] %v1217_v0 }
  0x6c   : > { %264 = vst [vmem:[%s1447_s3 + $0x50] sm:$0xff] %v1217_v0  ;;  %265 = vst [vmem:[%s1447_s3 + $0x58] sm:$0xff] %v1217_v0 }
  0x6d   : > { %266 = vst [vmem:[%s1447_s3 + $0x60] sm:$0xff] %v1217_v0  ;;  %267 = vst [vmem:[%s1447_s3 + $0x68] sm:$0xff] %v1217_v0 }
  0x6e   : > { %268 = vst [vmem:[%s1447_s3 + $0x70] sm:$0xff] %v1217_v0  ;;  %269 = vst [vmem:[%s1447_s3 + $0x78] sm:$0xff] %v1217_v0 }
  0x6f PF: > { %v349_v1 = vld [vmem:[%s1438_s24 + $0xf8] sm:$0xff]  ;;  %v348_v3 = vld [vmem:[%s1438_s24 + $0xf0] sm:$0xff]  ;;  %v347_v5 = vld [vmem:[%s1438_s24 + $0xe8] sm:$0xff]  ;;  %s1713_s29 = sld [smem:[#allocation11_spill]] }
  0x70   : > { %v333_v2 = vld [vmem:[%s1438_s24 + $0x78] sm:$0xff]  ;;  %752 = vmatprep.subr.mxu0 %v349_v1  ;;  %832 = vmatprep.subr.mxu1 %v349_v1  ;;  %v332_v4 = vld [vmem:[%s1438_s24 + $0x70] sm:$0xff]  ;;  %v331_v6 = vld [vmem:[%s1438_s24 + $0x68] sm:$0xff] }
  0x71   : > { %753 = vmatpush3.msra.mxu0 %v333_v2  ;;  %848 = vmatpush3.msra.mxu1 %v333_v2  ;;  %v346_v7 = vld [vmem:[%s1438_s24 + $0xe0] sm:$0xff]  ;;  %v345_v9 = vld [vmem:[%s1438_s24 + $0xd8] sm:$0xff]  ;;  %v344_v11 = vld [vmem:[%s1438_s24 + $0xd0] sm:$0xff] }
  0x72   : > { %754 = vmatprep.subr.mxu0 %v348_v3  ;;  %833 = vmatprep.subr.mxu1 %v348_v3  ;;  %v330_v8 = vld [vmem:[%s1438_s24 + $0x60] sm:$0xff]  ;;  %v329_v10 = vld [vmem:[%s1438_s24 + $0x58] sm:$0xff]  ;;  %v328_v12 = vld [vmem:[%s1438_s24 + $0x50] sm:$0xff] }
  0x73   : > { %755 = vmatpush3.msra.mxu0 %v332_v4  ;;  %849 = vmatpush3.msra.mxu1 %v332_v4  ;;  %v343_v13 = vld [vmem:[%s1438_s24 + $0xc8] sm:$0xff]  ;;  %v342_v15 = vld [vmem:[%s1438_s24 + $0xc0] sm:$0xff]  ;;  %v341_v17 = vld [vmem:[%s1438_s24 + $0xb8] sm:$0xff] }
  0x74   : > { %756 = vmatprep.subr.mxu0 %v347_v5  ;;  %834 = vmatprep.subr.mxu1 %v347_v5  ;;  %v327_v14 = vld [vmem:[%s1438_s24 + $0x48] sm:$0xff]  ;;  %v326_v16 = vld [vmem:[%s1438_s24 + $0x40] sm:$0xff]  ;;  %v325_v18 = vld [vmem:[%s1438_s24 + $0x38] sm:$0xff] }
  0x75   : > { %757 = vmatpush3.msra.mxu0 %v331_v6  ;;  %850 = vmatpush3.msra.mxu1 %v331_v6  ;;  %v340_v19 = vld [vmem:[%s1438_s24 + $0xb0] sm:$0xff]  ;;  %v339_v21 = vld [vmem:[%s1438_s24 + $0xa8] sm:$0xff]  ;;  %v338_v23 = vld [vmem:[%s1438_s24 + $0xa0] sm:$0xff]  ;;  %p743_p1 = scmp.ne.s32.totalorder %s1713_s29, 2 }
  0x76   : > { %758 = vmatprep.subr.mxu0 %v346_v7  ;;  %835 = vmatprep.subr.mxu1 %v346_v7  ;;  %v324_v20 = vld [vmem:[%s1438_s24 + $0x30] sm:$0xff]  ;;  %v323_v22 = vld [vmem:[%s1438_s24 + $0x28] sm:$0xff]  ;;  %v322_v24 = vld [vmem:[%s1438_s24 + $0x20] sm:$0xff]  ;;  %s1714_s8 = sld [smem:[#allocation17_spill]] (!%p743_p1) }
  0x77   : > { %759 = vmatpush3.msra.mxu0 %v330_v8  ;;  %851 = vmatpush3.msra.mxu1 %v330_v8  ;;  %v337_v25 = vld [vmem:[%s1438_s24 + $0x98] sm:$0xff]  ;;  %v336_v27 = vld [vmem:[%s1438_s24 + $0x90] sm:$0xff]  ;;  %v335_v29 = vld [vmem:[%s1438_s24 + $0x88] sm:$0xff] }
  0x78   : > { %760 = vmatprep.subr.mxu0 %v345_v9  ;;  %836 = vmatprep.subr.mxu1 %v345_v9  ;;  %v321_v26 = vld [vmem:[%s1438_s24 + $0x18] sm:$0xff]  ;;  %v320_v28 = vld [vmem:[%s1438_s24 + $0x10] sm:$0xff]  ;;  %v319_v30 = vld [vmem:[%s1438_s24 + $0x8] sm:$0xff] }
  0x79   : > { %761 = vmatpush3.msra.mxu0 %v329_v10  ;;  %852 = vmatpush3.msra.mxu1 %v329_v10  ;;  %v334_v31 = vld [vmem:[%s1438_s24 + $0x80] sm:$0xff]  ;;  %v287_v33 = vld [vmem:[%s1431_s21 + $0x8] sm:$0xff]  ;;  %v289_v37 = vld [vmem:[%s1431_s21 + $0x18] sm:$0xff] }
  0x7a   : > { %762 = vmatprep.subr.mxu0 %v344_v11  ;;  %837 = vmatprep.subr.mxu1 %v344_v11  ;;  %v318_v32 = vld [vmem:[%s1438_s24] sm:$0xff]  ;;  %v303_v34 = vld [vmem:[%s1431_s21 + $0x88] sm:$0xff]  ;;  %v305_v38 = vld [vmem:[%s1431_s21 + $0x98] sm:$0xff] }
  0x7b   : > { %763 = vmatpush3.msra.mxu0 %v328_v12  ;;  %853 = vmatpush3.msra.mxu1 %v328_v12  ;;  %v286_v35 = vld [vmem:[%s1431_s21] sm:$0xff]  ;;  %v288_v39 = vld [vmem:[%s1431_s21 + $0x10] sm:$0xff]  ;;  %v291_v41 = vld [vmem:[%s1431_s21 + $0x28] sm:$0xff] }
  0x7c   : > { %764 = vmatprep.subr.mxu0 %v343_v13  ;;  %838 = vmatprep.subr.mxu1 %v343_v13  ;;  %v302_v36 = vld [vmem:[%s1431_s21 + $0x80] sm:$0xff]  ;;  %v304_v40 = vld [vmem:[%s1431_s21 + $0x90] sm:$0xff]  ;;  %v307_v42 = vld [vmem:[%s1431_s21 + $0xa8] sm:$0xff] }
  0x7d   : > { %765 = vmatpush3.msra.mxu0 %v327_v14  ;;  %854 = vmatpush3.msra.mxu1 %v327_v14  ;;  %v290_v43 = vld [vmem:[%s1431_s21 + $0x20] sm:$0xff]  ;;  %v293_v45 = vld [vmem:[%s1431_s21 + $0x38] sm:$0xff]  ;;  %v292_v47 = vld [vmem:[%s1431_s21 + $0x30] sm:$0xff] }
  0x7e   : > { %766 = vmatprep.subr.mxu0 %v342_v15  ;;  %839 = vmatprep.subr.mxu1 %v342_v15  ;;  %v306_v44 = vld [vmem:[%s1431_s21 + $0xa0] sm:$0xff]  ;;  %v309_v46 = vld [vmem:[%s1431_s21 + $0xb8] sm:$0xff]  ;;  %v308_v48 = vld [vmem:[%s1431_s21 + $0xb0] sm:$0xff] }
  0x7f   : > { %767 = vmatpush3.msra.mxu0 %v326_v16  ;;  %855 = vmatpush3.msra.mxu1 %v326_v16  ;;  %v295_v49 = vld [vmem:[%s1431_s21 + $0x48] sm:$0xff]  ;;  %v294_v51 = vld [vmem:[%s1431_s21 + $0x40] sm:$0xff]  ;;  %v297_v53 = vld [vmem:[%s1431_s21 + $0x58] sm:$0xff] }
  0x80   : > { %768 = vmatprep.subr.mxu0 %v341_v17  ;;  %840 = vmatprep.subr.mxu1 %v341_v17  ;;  %v311_v50 = vld [vmem:[%s1431_s21 + $0xc8] sm:$0xff]  ;;  %v310_v52 = vld [vmem:[%s1431_s21 + $0xc0] sm:$0xff]  ;;  %v313_v54 = vld [vmem:[%s1431_s21 + $0xd8] sm:$0xff] }
  0x81   : > { %769 = vmatpush3.msra.mxu0 %v325_v18  ;;  %856 = vmatpush3.msra.mxu1 %v325_v18  ;;  %v296_v55 = vld [vmem:[%s1431_s21 + $0x50] sm:$0xff]  ;;  %v299_v57 = vld [vmem:[%s1431_s21 + $0x68] sm:$0xff]  ;;  %v298_v59 = vld [vmem:[%s1431_s21 + $0x60] sm:$0xff] }
  0x82   : > { %770 = vmatprep.subr.mxu0 %v340_v19  ;;  %841 = vmatprep.subr.mxu1 %v340_v19  ;;  %v312_v56 = vld [vmem:[%s1431_s21 + $0xd0] sm:$0xff]  ;;  %v315_v58 = vld [vmem:[%s1431_s21 + $0xe8] sm:$0xff]  ;;  %v314_v60 = vld [vmem:[%s1431_s21 + $0xe0] sm:$0xff] }
  0x83   : > { %771 = vmatpush3.msra.mxu0 %v324_v20  ;;  %857 = vmatpush3.msra.mxu1 %v324_v20  ;;  %v301_v61 = vld [vmem:[%s1431_s21 + $0x78] sm:$0xff]  ;;  %v300_v63 = vld [vmem:[%s1431_s21 + $0x70] sm:$0xff]  ;;  %v270_v3 = vld [vmem:[%s1447_s3] sm:$0xff] }
  0x84   : > { %772 = vmatprep.subr.mxu0 %v339_v21  ;;  %842 = vmatprep.subr.mxu1 %v339_v21  ;;  %v317_v62 = vld [vmem:[%s1431_s21 + $0xf8] sm:$0xff]  ;;  %v316_v0 = vld [vmem:[%s1431_s21 + $0xf0] sm:$0xff]  ;;  %v278_v5 = vld [vmem:[%s1447_s3 + $0x40] sm:$0xff] }
  0x85   : > { %773 = vmatpush3.msra.mxu0 %v323_v22  ;;  %858 = vmatpush3.msra.mxu1 %v323_v22  ;;  %v271_v13 = vld [vmem:[%s1447_s3 + $0x8] sm:$0xff] }
  0x86   : > { %774 = vmatprep.subr.mxu0 %v338_v23  ;;  %843 = vmatprep.subr.mxu1 %v338_v23  ;;  %v279_v15 = vld [vmem:[%s1447_s3 + $0x48] sm:$0xff]  ;;  %v272_v23 = vld [vmem:[%s1447_s3 + $0x10] sm:$0xff] }
  0x87   : > { %775 = vmatpush3.msra.mxu0 %v322_v24  ;;  %859 = vmatpush3.msra.mxu1 %v322_v24 }
  0x88   : > { %776 = vmatprep.subr.mxu0 %v337_v25  ;;  %844 = vmatprep.subr.mxu1 %v337_v25  ;;  %v280_v25 = vld [vmem:[%s1447_s3 + $0x50] sm:$0xff] }
  0x89   : > { %777 = vmatpush3.msra.mxu0 %v321_v26  ;;  %860 = vmatpush3.msra.mxu1 %v321_v26 }
  0x8a   : > { %778 = vmatprep.subr.mxu0 %v336_v27  ;;  %845 = vmatprep.subr.mxu1 %v336_v27 }
  0x8b   : > { %779 = vmatpush3.msra.mxu0 %v320_v28  ;;  %861 = vmatpush3.msra.mxu1 %v320_v28 }
  0x8c   : > { %780 = vmatprep.subr.mxu0 %v335_v29  ;;  %846 = vmatprep.subr.mxu1 %v335_v29 }
  0x8d   : > { %781 = vmatpush3.msra.mxu0 %v319_v30  ;;  %862 = vmatpush3.msra.mxu1 %v319_v30 }
  0x8e   : > { %782 = vmatprep.subr.mxu0 %v334_v31  ;;  %847 = vmatprep.subr.mxu1 %v334_v31 }
  0x8f   : > { %783 = vmatpush3.msra.mxu0 %v318_v32  ;;  %863 = vmatpush3.msra.mxu1 %v318_v32 }
  0x90   : > { %414 = vmatprep.mubr.f32.mxu0 %v287_v33  ;;  %454 = vmatprep.mubr.f32.mxu1 %v303_v34  ;;  %v273_v33 = vld [vmem:[%s1447_s3 + $0x18] sm:$0xff] }
  0x91   : > { %415 = vmatmul.mubr.f32.vlgmr.msra.gmra.mxu0 %v286_v35  ;;  %455 = vmatmul.mubr.f32.vlgmr.msra.gmra.mxu1 %v302_v36  ;;  %v281_v35 = vld [vmem:[%s1447_s3 + $0x58] sm:$0xff] }
  0x92   : > { %419 = vmatprep.mubr.f32.mxu0 %v289_v37  ;;  %459 = vmatprep.mubr.f32.mxu1 %v305_v38 }
  0x95   : > { %420 = vmatmul.mubr.f32.gmra.mxu0 %v288_v39  ;;  %460 = vmatmul.mubr.f32.gmra.mxu1 %v304_v40 }
  0x96   : > { %424 = vmatprep.mubr.f32.mxu0 %v291_v41  ;;  %464 = vmatprep.mubr.f32.mxu1 %v307_v42 }
  0x99   : > { %425 = vmatmul.mubr.f32.gmra.mxu0 %v290_v43  ;;  %465 = vmatmul.mubr.f32.gmra.mxu1 %v306_v44  ;;  %v274_v43 = vld [vmem:[%s1447_s3 + $0x20] sm:$0xff] }
  0x9a   : > { %429 = vmatprep.mubr.f32.mxu0 %v293_v45  ;;  %469 = vmatprep.mubr.f32.mxu1 %v309_v46  ;;  %v282_v45 = vld [vmem:[%s1447_s3 + $0x60] sm:$0xff] }
  0x9d   : > { %430 = vmatmul.mubr.f32.gmra.mxu0 %v292_v47  ;;  %470 = vmatmul.mubr.f32.gmra.mxu1 %v308_v48 }
  0x9e   : > { %434 = vmatprep.mubr.f32.mxu0 %v295_v49  ;;  %474 = vmatprep.mubr.f32.mxu1 %v311_v50 }
  0xa1   : > { %435 = vmatmul.mubr.f32.gmra.mxu0 %v294_v51  ;;  %475 = vmatmul.mubr.f32.gmra.mxu1 %v310_v52 }
  0xa2   : > { %439 = vmatprep.mubr.f32.mxu0 %v297_v53  ;;  %479 = vmatprep.mubr.f32.mxu1 %v313_v54  ;;  %v275_v53 = vld [vmem:[%s1447_s3 + $0x28] sm:$0xff] }
  0xa5   : > { %440 = vmatmul.mubr.f32.gmra.mxu0 %v296_v55  ;;  %480 = vmatmul.mubr.f32.gmra.mxu1 %v312_v56  ;;  %v283_v55 = vld [vmem:[%s1447_s3 + $0x68] sm:$0xff] }
  0xa6   : > { %444 = vmatprep.mubr.f32.mxu0 %v299_v57  ;;  %484 = vmatprep.mubr.f32.mxu1 %v315_v58 }
  0xa9   : > { %445 = vmatmul.mubr.f32.gmra.mxu0 %v298_v59  ;;  %485 = vmatmul.mubr.f32.gmra.mxu1 %v314_v60 }
  0xaa   : > { %449 = vmatprep.mubr.f32.mxu0 %v301_v61  ;;  %489 = vmatprep.mubr.f32.mxu1 %v317_v62 }
  0xad   : > { %450 = vmatmul.mubr.f32.gmra.mxu0 %v300_v63  ;;  %490 = vmatmul.mubr.f32.gmra.mxu1 %v316_v0  ;;  %v276_v63 = vld [vmem:[%s1447_s3 + $0x30] sm:$0xff] }
 0x151   : > { %v784_v1 = vpop.f32.mrf.mxu0  ;;  %v808_v2 = vpop.f32.mrf.mxu1 }
 0x153   : > { %v785_v4 = vpop.f32.mrf.mxu0  ;;  %v809_v6 = vpop.f32.mrf.mxu1 }
 0x154   : > { %v786_v7 = vadd.f32 %v785_v4, %v784_v1  ;;  %v810_v8 = vadd.f32 %v809_v6, %v808_v2  ;;  %v284_v1 = vld [vmem:[%s1447_s3 + $0x70] sm:$0xff] }
 0x155   : > { %v787_v9 = vpop.f32.mrf.mxu0  ;;  %v811_v10 = vpop.f32.mrf.mxu1 }
 0x156   : > { %v495_v11 = vadd.f32 %v786_v7, %v270_v3  ;;  %v503_v12 = vadd.f32 %v810_v8, %v278_v5 }
 0x157   : > { %v788_v14 = vpop.f32.mrf.mxu0  ;;  %v812_v16 = vpop.f32.mrf.mxu1 }
 0x158   : > { %511 = vst [vmem:[%s1447_s3] sm:$0xff] %v495_v11  ;;  %519 = vst [vmem:[%s1447_s3 + $0x40] sm:$0xff] %v503_v12  ;;  %v789_v17 = vadd.f32 %v788_v14, %v787_v9  ;;  %v813_v18 = vadd.f32 %v812_v16, %v811_v10  ;;  %v277_v9 = vld [vmem:[%s1447_s3 + $0x38] sm:$0xff] }
 0x159   : > { %v790_v19 = vpop.f32.mrf.mxu0  ;;  %v814_v20 = vpop.f32.mrf.mxu1  ;;  %v285_v11 = vld [vmem:[%s1447_s3 + $0x78] sm:$0xff] }
 0x15a   : > { %v496_v21 = vadd.f32 %v789_v17, %v271_v13  ;;  %v504_v22 = vadd.f32 %v813_v18, %v279_v15 }
 0x15b   : > { %v791_v24 = vpop.f32.mrf.mxu0  ;;  %v815_v26 = vpop.f32.mrf.mxu1 }
 0x15c   : > { %512 = vst [vmem:[%s1447_s3 + $0x8] sm:$0xff] %v496_v21  ;;  %520 = vst [vmem:[%s1447_s3 + $0x48] sm:$0xff] %v504_v22  ;;  %v792_v27 = vadd.f32 %v791_v24, %v790_v19  ;;  %v816_v28 = vadd.f32 %v815_v26, %v814_v20 }
 0x15d   : > { %v793_v29 = vpop.f32.mrf.mxu0  ;;  %v817_v30 = vpop.f32.mrf.mxu1 }
 0x15e   : > { %v497_v31 = vadd.f32 %v792_v27, %v272_v23  ;;  %v505_v32 = vadd.f32 %v816_v28, %v280_v25 }
 0x15f   : > { %v794_v34 = vpop.f32.mrf.mxu0  ;;  %v818_v36 = vpop.f32.mrf.mxu1 }
 0x160   : > { %513 = vst [vmem:[%s1447_s3 + $0x10] sm:$0xff] %v497_v31  ;;  %521 = vst [vmem:[%s1447_s3 + $0x50] sm:$0xff] %v505_v32  ;;  %v795_v37 = vadd.f32 %v794_v34, %v793_v29  ;;  %v819_v38 = vadd.f32 %v818_v36, %v817_v30 }
 0x161   : > { %v796_v39 = vpop.f32.mrf.mxu0  ;;  %v820_v40 = vpop.f32.mrf.mxu1 }
 0x162   : > { %v498_v41 = vadd.f32 %v795_v37, %v273_v33  ;;  %v506_v42 = vadd.f32 %v819_v38, %v281_v35 }
 0x163   : > { %v797_v44 = vpop.f32.mrf.mxu0  ;;  %v821_v46 = vpop.f32.mrf.mxu1 }
 0x164   : > { %514 = vst [vmem:[%s1447_s3 + $0x18] sm:$0xff] %v498_v41  ;;  %522 = vst [vmem:[%s1447_s3 + $0x58] sm:$0xff] %v506_v42  ;;  %v798_v47 = vadd.f32 %v797_v44, %v796_v39  ;;  %v822_v48 = vadd.f32 %v821_v46, %v820_v40 }
 0x165   : > { %v799_v49 = vpop.f32.mrf.mxu0  ;;  %v823_v50 = vpop.f32.mrf.mxu1 }
 0x166   : > { %v499_v51 = vadd.f32 %v798_v47, %v274_v43  ;;  %v507_v52 = vadd.f32 %v822_v48, %v282_v45 }
 0x167   : > { %v800_v54 = vpop.f32.mrf.mxu0  ;;  %v824_v56 = vpop.f32.mrf.mxu1 }
 0x168   : > { %515 = vst [vmem:[%s1447_s3 + $0x20] sm:$0xff] %v499_v51  ;;  %523 = vst [vmem:[%s1447_s3 + $0x60] sm:$0xff] %v507_v52  ;;  %v801_v57 = vadd.f32 %v800_v54, %v799_v49  ;;  %v825_v58 = vadd.f32 %v824_v56, %v823_v50 }
 0x169   : > { %v802_v59 = vpop.f32.mrf.mxu0  ;;  %v826_v60 = vpop.f32.mrf.mxu1 }
 0x16a   : > { %v500_v61 = vadd.f32 %v801_v57, %v275_v53  ;;  %v508_v62 = vadd.f32 %v825_v58, %v283_v55 }
 0x16b   : > { %v803_v0 = vpop.f32.mrf.mxu0  ;;  %v827_v2 = vpop.f32.mrf.mxu1 }
 0x16c   : > { %516 = vst [vmem:[%s1447_s3 + $0x28] sm:$0xff] %v500_v61  ;;  %524 = vst [vmem:[%s1447_s3 + $0x68] sm:$0xff] %v508_v62  ;;  %v804_v3 = vadd.f32 %v803_v0, %v802_v59  ;;  %v828_v4 = vadd.f32 %v827_v2, %v826_v60 }
 0x16d   : > { %v805_v5 = vpop.f32.mrf.mxu0  ;;  %v829_v6 = vpop.f32.mrf.mxu1 }
 0x16e   : > { %v501_v7 = vadd.f32 %v804_v3, %v276_v63  ;;  %v509_v8 = vadd.f32 %v828_v4, %v284_v1 }
 0x16f   : > { %v806_v10 = vpop.f32.mrf.mxu0  ;;  %v830_v12 = vpop.f32.mrf.mxu1 }
 0x170   : > { %517 = vst [vmem:[%s1447_s3 + $0x30] sm:$0xff] %v501_v7  ;;  %525 = vst [vmem:[%s1447_s3 + $0x70] sm:$0xff] %v509_v8  ;;  %v807_v13 = vadd.f32 %v806_v10, %v805_v5  ;;  %v831_v14 = vadd.f32 %v830_v12, %v829_v6  ;;  %530 = sbr.rel (%p743_p1) target bundleno = 387 (0x183), region = 48 }
 0x172   : > { %v502_v15 = vadd.f32 %v807_v13, %v277_v9  ;;  %v510_v16 = vadd.f32 %v831_v14, %v285_v11 }
 0x174   : > { %518 = vst [vmem:[%s1447_s3 + $0x38] sm:$0xff] %v502_v15  ;;  %526 = vst [vmem:[%s1447_s3 + $0x78] sm:$0xff] %v510_v16 }
 0x175   : > { %v531_v17 = vld [vmem:[%s1447_s3] sm:$0xff]  ;;  %v532_v19 = vld [vmem:[%s1447_s3 + $0x8] sm:$0xff]  ;;  %v533_v22 = vld [vmem:[%s1447_s3 + $0x10] sm:$0xff] }
 0x176   : > { %v744_v18 = vld [vmem:[%s1714_s8] ss:$0 sm:$0xff]  ;;  %v534_v23 = vld [vmem:[%s1447_s3 + $0x18] sm:$0xff]  ;;  %v536_v28 = vld [vmem:[%s1447_s3 + $0x28] sm:$0xff] }
 0x177   : > { %v554_v20 = vadd.f32 %v744_v18, %v531_v17  ;;  %v555_v21 = vadd.f32 %v744_v18, %v532_v19  ;;  %v535_v24 = vld [vmem:[%s1447_s3 + $0x20] sm:$0xff]  ;;  %v556_v25 = vadd.f32 %v744_v18, %v533_v22  ;;  %v557_v26 = vadd.f32 %v744_v18, %v534_v23  ;;  %v537_v29 = vld [vmem:[%s1447_s3 + $0x30] sm:$0xff]  ;;  %v540_v36 = vld [vmem:[%s1447_s3 + $0x48] sm:$0xff] }
 0x178   : > { %v558_v27 = vadd.f32 %v744_v18, %v535_v24  ;;  %v559_v33 = vadd.f32 %v744_v18, %v536_v28  ;;  %v560_v34 = vadd.f32 %v744_v18, %v537_v29  ;;  %v539_v35 = vld [vmem:[%s1447_s3 + $0x40] sm:$0xff]  ;;  %v541_v37 = vld [vmem:[%s1447_s3 + $0x50] sm:$0xff]  ;;  %v542_v42 = vld [vmem:[%s1447_s3 + $0x58] sm:$0xff]  ;;  %v563_v48 = vadd.f32 %v744_v18, %v540_v36 }
 0x179   : > { %v570_v31 = vmax.f32 %v554_v20, 0.0  ;;  %v571_v32 = vmax.f32 %v555_v21, 0.0  ;;  %v572_v38 = vmax.f32 %v556_v25, 0.0  ;;  %v573_v39 = vmax.f32 %v557_v26, 0.0  ;;  %v543_v43 = vld [vmem:[%s1447_s3 + $0x60] sm:$0xff]  ;;  %v544_v44 = vld [vmem:[%s1447_s3 + $0x68] sm:$0xff] }
 0x17a   : > { %v574_v40 = vmax.f32 %v558_v27, 0.0  ;;  %v575_v45 = vmax.f32 %v559_v33, 0.0  ;;  %v576_v46 = vmax.f32 %v560_v34, 0.0  ;;  %v562_v47 = vadd.f32 %v744_v18, %v539_v35  ;;  %v545_v49 = vld [vmem:[%s1447_s3 + $0x70] sm:$0xff] }
 0x17b   : > { %v538_v30 = vld [vmem:[%s1447_s3 + $0x38] sm:$0xff]  ;;  %586 = vst [vmem:[%s1447_s3] sm:$0xff] %v570_v31  ;;  %587 = vst [vmem:[%s1447_s3 + $0x8] sm:$0xff] %v571_v32  ;;  %v564_v52 = vadd.f32 %v744_v18, %v541_v37  ;;  %v565_v53 = vadd.f32 %v744_v18, %v542_v42  ;;  %v566_v54 = vadd.f32 %v744_v18, %v543_v43  ;;  %v579_v56 = vmax.f32 %v563_v48, 0.0 }
 0x17c   : > { %v561_v41 = vadd.f32 %v744_v18, %v538_v30  ;;  %v546_v50 = vld [vmem:[%s1447_s3 + $0x78] sm:$0xff]  ;;  %588 = vst [vmem:[%s1447_s3 + $0x10] sm:$0xff] %v572_v38  ;;  %589 = vst [vmem:[%s1447_s3 + $0x18] sm:$0xff] %v573_v39  ;;  %v578_v55 = vmax.f32 %v562_v47, 0.0  ;;  %v567_v57 = vadd.f32 %v744_v18, %v544_v44  ;;  %v568_v58 = vadd.f32 %v744_v18, %v545_v49 }
 0x17d   : > { %590 = vst [vmem:[%s1447_s3 + $0x20] sm:$0xff] %v574_v40  ;;  %591 = vst [vmem:[%s1447_s3 + $0x28] sm:$0xff] %v575_v45  ;;  %v580_v59 = vmax.f32 %v564_v52, 0.0  ;;  %v581_v60 = vmax.f32 %v565_v53, 0.0  ;;  %v582_v61 = vmax.f32 %v566_v54, 0.0  ;;  %v569_v62 = vadd.f32 %v744_v18, %v546_v50 }
 0x17e   : > { %v577_v51 = vmax.f32 %v561_v41, 0.0  ;;  %592 = vst [vmem:[%s1447_s3 + $0x30] sm:$0xff] %v576_v46  ;;  %594 = vst [vmem:[%s1447_s3 + $0x40] sm:$0xff] %v578_v55  ;;  %v583_v63 = vmax.f32 %v567_v57, 0.0  ;;  %v584_v0 = vmax.f32 %v568_v58, 0.0 }
 0x17f   : > { %595 = vst [vmem:[%s1447_s3 + $0x48] sm:$0xff] %v579_v56  ;;  %596 = vst [vmem:[%s1447_s3 + $0x50] sm:$0xff] %v580_v59  ;;  %v585_v1 = vmax.f32 %v569_v62, 0.0 }
 0x180   : > { %593 = vst [vmem:[%s1447_s3 + $0x38] sm:$0xff] %v577_v51  ;;  %597 = vst [vmem:[%s1447_s3 + $0x58] sm:$0xff] %v581_v60 }
 0x181   : > { %598 = vst [vmem:[%s1447_s3 + $0x60] sm:$0xff] %v582_v61  ;;  %599 = vst [vmem:[%s1447_s3 + $0x68] sm:$0xff] %v583_v63 }
 0x182   : > { %600 = vst [vmem:[%s1447_s3 + $0x70] sm:$0xff] %v584_v0  ;;  %601 = vst [vmem:[%s1447_s3 + $0x78] sm:$0xff] %v585_v1 }
 0x183 PF: > { %s1715_s15 = sld [smem:[#allocation12_spill]]  ;;  %s616_s26 = sshll.u32 %s1447_s3, 4  ;;  %s1605_s26 = int_to_ptr.vmem [resolvable:$true] %s616_s26 }
 0x184   : > { %s1716_s6 = sld [smem:[#allocation18_spill]]  ;;  %s1609_s24 = scalar_lea.sflag [#allocation4], %s243_s27 }
 0x185   : > { %s1060_s11 = scalar_lea.vmem %s1605_s26, 2048  ;;  %s1218_s2 = smov [#allocation7]  }
 0x186   : > { %p1061_p3 = scmp.ne.s32.totalorder %s1605_s26, %s1060_s11  ;;  %s1064_s29 = sshll.u32 %s1218_s2, 4  ;;  %s1065_s29 = int_to_ptr.vmem [resolvable:$false] %s1064_s29 }
 0x187   : > { %s1066_s28 = scalar_lea.vmem %s1065_s29, 4096  ;;  %p1067_p12 = scmp.lt.s32.totalorder %s1605_s26, %s1065_s29 }
 0x188   : > { %p1062_p13 = pnand %p1061_p3, %p1403_p6  ;;  %p1068_p0 = scmp.lt.s32.totalorder %s1066_s28, %s1060_s11 }
 0x189   : > { %s751_s30 = sshll.u32 %s1715_s15, 11 }
 0x18a   : > { %s1602_s5 = scalar_lea.hbm %s1716_s6, %s751_s30  ;;  %p1063_p2 = pneg %p1062_p13 }
 0x18b   : > { %p1069_p9 = por %p1068_p0, %p1067_p12 }
 0x18d   : > { %p1070_p4 = pnand %p1069_p9, %p1063_p2 }
 0x18f   : > { %1073 = shalt.err (!%p1070_p4)
}
 0x190   : > { %s1074_s27 = scalar_lea.hbm %s1602_s5, 2048  ;;  %s1078_s8 = scalar_lea.hbm %s1716_s6, 4096 }
 0x191   : > { %p1075_p7 = scmp.ne.s32.totalorder %s1602_s5, %s1074_s27  ;;  %p1079_p10 = scmp.lt.s32.totalorder %s1602_s5, %s1716_s6 }
 0x192   : > { %p1080_p11 = scmp.lt.s32.totalorder %s1078_s8, %s1074_s27 }
 0x193   : > { %p1076_p5 = pnand %p1075_p7, %p1403_p6 }
 0x194   : > { %p1081_p1 = por %p1080_p11, %p1079_p10 }
 0x195   : > { %p1077_p8 = pneg %p1076_p5 }
 0x197   : > { %p1082_p3 = pnand %p1081_p1, %p1077_p8 }
 0x199   : > { %1085 = shalt.err (!%p1082_p3)
}
 0x19a   : > { %s1219_s0 = smov 128   ;;  %s1220_s21 = smov 8  }
 0x19b   : > { %869 = dma.vmem_to_hbm [thread:$0]  (%p1403_p6), %s1605_s26, 2048, %s1602_s5, %s1609_s24, %s1219_s0, %s1219_s0, %s1220_s21  }
 0x19c PF: > { %p883_p13 = scmp.ge.s32.totalorder %s1208_s25, 2  ;;  %s631_s11 = sand.u32 1, %s1156_s12  }
 0x19d   : > { %p1717_p2 = scmp.ne.s32.totalorder %s1709_s4, 0  ;;  %s632_s2 = scalar_lea.sflag [#allocation4], %s631_s11 }
 0x19f   : > { %p879_p12 = pnand %p883_p13, %p1717_p2 }
 0x1a1   : > { %p880_p0 = pneg %p879_p12 }
 0x1a3   : > { %1151 = dma.done.wait (%p880_p0), %s632_s2, 2048  }
 0x1a4   : > { %1153 = vsyncadd (%p880_p0), %s632_s2, 4294965248  ;;  %s22_s25 = sadd.s32 1, %s1208_s25   ;;  %s1719_s4 = sld [smem:[#allocation13_spill]] }
 0x1a5   : > { %p1637_p9 = scmp.ge.s32.totalorder %s22_s25, 8   ;;  %s1720_s5 = sld [smem:[#allocation14_spill]] }
 0x1a6   : > { %s1721_s24 = sld [smem:[#allocation15_spill]]  ;;  %s1722_s12 = smov %s1160_s13 }
 0x1a7   : > { %s1723_s13 = smov %s1164_s14  ;;  %s1724_s14 = smov %s1341_s9 }
 0x1a8   : > { %s1725_s15 = smov %s1172_s16  ;;  %s1726_s16 = smov %s1176_s17 }
 0x1a9   : > { %s1727_s17 = smov %s1387_s22  ;;  %s1728_s18 = smov %s1184_s19 }
 0x1aa   : > { %s1729_s19 = smov %s1188_s20  ;;  %s1730_s20 = smov %s1344_s10 }
 0x1ab   : > { %s1731_s21 = smov %s1200_s23  ;;  %s1732_s22 = smov %s1719_s4 }
 0x1ac   : > { %s1733_s23 = smov %s1720_s5  ;;  %21 = sbr.rel (!%p1637_p9) target bundleno = 16 (0x10), region = 98 }
 0x1b1   :  { %637 = vsyncpa [#allocation3], 1 }
 0x1b2   :  { %639 = vsyncpa [#allocation3 + $0x1], 1 }
 0x1b3   :  { %640 = vsyncpa [#allocation6], 1 }
 0x1b4   :  { %642 = vsyncpa [#allocation6 + $0x1], 1 }
 0x1b5   :  { %643 = vsyncpa [#allocation4], 1 }
 0x1b6   :  { %645 = vsyncpa [#allocation4 + $0x1], 1 }

</bundles_post_ra>
